<compile_context>
chip_gen: v5e
topology: v5e:2x2
jax: 0.10.0
libtpu: 0.0.40
codegen_flags: <defaults>
</compile_context>

<pallas_src>
import functools

import jax
import jax.numpy as jnp
from jax import lax
from jax.experimental import pallas as pl
from jax.experimental.pallas import tpu as pltpu

EPS = 1e-8                      # self.eps in the PyTorch module
NUM_CORES = 2                   # leading "parallel" axis (v7x megacore; no-op on 1-TC chips)
ACC_W = 512                     # max accumulator lane width (decoupled from tile width)
TARGET_BLOCK_BYTES = 2 << 20    # ~2 MiB per (B, tile) f32 block -> near HBM roofline
VMEM_LIMIT_BYTES = 32 << 20     # > v5e 16 MiB scoped default; fits v7x 64 MiB VMEM


def _round_up(x, m):
    return ((x + m - 1) // m) * m


def _cdiv(a, b):
    return -(-a // b)


def _pick_tile(n, batch, block_bytes):
    """(tile_width, acc_width, num_tiles) for one flattened (B, n) stream."""
    if n <= 128:
        # Tiny stream: one block equal to the full array dims (no garbage, no mask).
        return n, n, 1
    n_floor = (n // 128) * 128                                  # widest aligned width <= n
    tile = _round_up(max(block_bytes // (4 * batch), 128), 128)  # ~block_bytes per block
    tile = min(tile, n_floor)
    acc_w = min(ACC_W, tile)
    tile = max((tile // acc_w) * acc_w, acc_w)                   # multiple of acc width
    return tile, acc_w, _cdiv(n, tile)


# ---------------------------------------------------------------------------
# Fused kernel: pressure KLD + contact BCE-with-logits partials + com MSE
# ---------------------------------------------------------------------------

def _make_fused_loss_kernel(*, batch, n_p, n_c, tile_p, tile_c, acc_p, acc_c,
                            tiles_p, tiles_c, tiles_per_core):
    mask_p = (n_p % tile_p) != 0          # ragged tail -> in-kernel lane mask
    mask_c = (n_c % tile_c) != 0
    gate_p = tiles_p < NUM_CORES * tiles_per_core
    gate_c = tiles_c < NUM_CORES * tiles_per_core

    def kernel(pp_ref, pt_ref, cp_ref, ct_ref, comp_ref, comt_ref,
               o_ref, kld_acc, bce_acc):
        core = pl.program_id(0)
        k = pl.program_id(1)
        tile_idx = core * tiles_per_core + k

        @pl.when(k == 0)
        def _init():
            kld_acc[...] = jnp.zeros_like(kld_acc)
            bce_acc[...] = jnp.zeros_like(bce_acc)

        # ---- pressure KLD partial: t * (log t - log p) ----------------------
        def kld_partial():
            acc = kld_acc[...]                                   # (B, acc_p), one load
            base = tile_idx * tile_p
            lane = lax.broadcasted_iota(jnp.int32, (batch, acc_p), 1)
            for s in range(tile_p // acc_p):                     # static unroll
                sl = slice(s * acc_p, (s + 1) * acc_p)
                p = jnp.clip(pp_ref[:, sl].astype(jnp.float32), EPS, 1.0)
                t = jnp.clip(pt_ref[:, sl].astype(jnp.float32), EPS, 1.0)
                val = t * (jnp.log(t) - jnp.log(p))
                if mask_p:
                    val = jnp.where(lane + (base + s * acc_p) < n_p, val, 0.0)
                acc = acc + val
            kld_acc[...] = acc                                   # one store

        # ---- contact BCE-with-logits partial --------------------------------
        def bce_partial():
            acc = bce_acc[...]                                   # (B, acc_c)
            base = tile_idx * tile_c
            lane = lax.broadcasted_iota(jnp.int32, (batch, acc_c), 1)
            for s in range(tile_c // acc_c):
                sl = slice(s * acc_c, (s + 1) * acc_c)
                x = cp_ref[:, sl].astype(jnp.float32)
                y = ct_ref[:, sl].astype(jnp.float32)
                val = jnp.maximum(x, 0.0) - x * y + jnp.log1p(jnp.exp(-jnp.abs(x)))
                if mask_c:
                    val = jnp.where(lane + (base + s * acc_c) < n_c, val, 0.0)
                acc = acc + val
            bce_acc[...] = acc

        if gate_p:
            pl.when(tile_idx < tiles_p)(kld_partial)
        else:
            kld_partial()
        if gate_c:
            pl.when(tile_idx < tiles_c)(bce_partial)
        else:
            bce_partial()

        # ---- finalize: one cross-lane reduce per core + com ------------------
        @pl.when(k == pl.num_programs(1) - 1)
        def _finalize():
            kld_part = jnp.sum(kld_acc[...])     # un-normalized per-core partial
            bce_part = jnp.sum(bce_acc[...])

            cpm = comp_ref[...].astype(jnp.float32)              # (B, 4)
            ctm = comt_ref[...].astype(jnp.float32)              # (B, 4)
            valid = (ctm[:, 3:4] > 0.0).astype(jnp.float32)      # (B, 1)
            diff = (cpm[:, 0:3] - ctm[:, 0:3]) * valid           # (B, 3)
            cnt = jnp.sum(valid) * 3.0
            ssq = jnp.sum(diff * diff)
            com = jnp.where(cnt > 0.0, ssq / jnp.maximum(cnt, 1.0), 0.0)

            lane = lax.broadcasted_iota(jnp.int32, o_ref.shape, 2)
            o_ref[...] = (jnp.where(lane == 0, kld_part, 0.0)
                          + jnp.where(lane == 1, bce_part, 0.0)
                          + jnp.where(lane == 2, com, 0.0))

    return kernel


# ---------------------------------------------------------------------------
# Wrapper
# ---------------------------------------------------------------------------

@functools.partial(jax.jit, static_argnames=("lambdas", "block_bytes"))
def _fused_pressure_loss(pressure_pred, pressure_tgt, contact_pred, contact_tgt,
                         com_pred, com_tgt, lambdas=(1.0, 0.5, 0.25),
                         block_bytes=TARGET_BLOCK_BYTES):
    lam_p, lam_c, lam_m = (float(v) for v in lambdas)

    B = pressure_pred.shape[0]
    pp = pressure_pred.reshape(B, -1)
    pt = pressure_tgt.reshape(B, -1)
    cp = contact_pred.reshape(B, -1)
    ct = contact_tgt.reshape(B, -1)
    n_p = pp.shape[1]
    n_c = cp.shape[1]
    if n_p == 0 or n_c == 0:
        raise ValueError("empty pressure/contact modality is not supported")

    tile_p, acc_p, tiles_p = _pick_tile(n_p, B, block_bytes)
    tile_c, acc_c, tiles_c = _pick_tile(n_c, B, block_bytes)
    tiles_per_core = _cdiv(max(tiles_p, tiles_c), NUM_CORES)

    kernel = _make_fused_loss_kernel(
        batch=B, n_p=n_p, n_c=n_c, tile_p=tile_p, tile_c=tile_c,
        acc_p=acc_p, acc_c=acc_c, tiles_p=tiles_p, tiles_c=tiles_c,
        tiles_per_core=tiles_per_core)

    def p_map(c, k):
        return (0, jnp.minimum(c * tiles_per_core + k, tiles_p - 1))

    def c_map(c, k):
        return (0, jnp.minimum(c * tiles_per_core + k, tiles_c - 1))

    spec_p = pl.BlockSpec((B, tile_p), p_map)
    spec_c = pl.BlockSpec((B, tile_c), c_map)
    spec_com = pl.BlockSpec((B, 4), lambda c, k: (0, 0))

    cost = pl.CostEstimate(
        flops=5 * B * (n_p + n_c),
        transcendentals=2 * B * (n_p + n_c),
        bytes_accessed=sum(int(x.size) * x.dtype.itemsize
                           for x in (pp, pt, cp, ct, com_pred, com_tgt))
                       + NUM_CORES * 8 * 128 * 4,
    )

    out = pl.pallas_call(
        kernel,
        out_shape=jax.ShapeDtypeStruct((NUM_CORES, 8, 128), jnp.float32),
        grid_spec=pltpu.PrefetchScalarGridSpec(
            num_scalar_prefetch=0,
            grid=(NUM_CORES, tiles_per_core),
            in_specs=[spec_p, spec_p, spec_c, spec_c, spec_com, spec_com],
            out_specs=pl.BlockSpec((1, 8, 128), lambda c, k: (c, 0, 0)),
            scratch_shapes=[
                pltpu.VMEM((B, acc_p), jnp.float32),   # KLD partial accumulator
                pltpu.VMEM((B, acc_c), jnp.float32),   # BCE partial accumulator
            ],
        ),
        compiler_params=pltpu.CompilerParams(
            dimension_semantics=("parallel", "arbitrary"),
            vmem_limit_bytes=VMEM_LIMIT_BYTES),
        cost_estimate=cost,
    )(pp, pt, cp, ct, com_pred, com_tgt)

    inv_b = 1.0 / float(B)                       # KLD 'batchmean' divisor
    inv_bn = 1.0 / float(max(B * n_c, 1))        # BCE 'mean' divisor (guarded)

    parts = out[:, 0, :]                         # (NUM_CORES, 128)
    kld = jnp.sum(parts[:, 0]) * inv_b
    bce = jnp.sum(parts[:, 1]) * inv_bn
    com = parts[0, 2]
    total = lam_p * kld + lam_c * bce + lam_m * com
    return kld, bce, com, total


# ---------------------------------------------------------------------------
# Module wrapper
# ---------------------------------------------------------------------------

class PressureLossPallas:
    """Mirrors PressureLoss.forward with the config baked in above."""

    def __init__(self):
        self.mode = ["pressure", "contact", "com"]
        self.lambdas = {"pressure": 1.0, "contact": 0.5, "com": 0.25}

    def __call__(self, output, target):
        # TODO(synk): only the full ['pressure','contact','com'] config with
        # batchmean/mean/mean reductions is fused; other config-driven modality
        # subsets / the 'sum' reduction path are not implemented here.
        for m in self.mode:
            if m not in output or m not in target:
                raise ValueError(f"missing modality: {m}")

        kld, bce, com, total = _fused_pressure_loss(
            output["pressure"], target["pressure"],
            output["contact"], target["contact"],
            output["com"], target["com"],
            lambdas=(self.lambdas["pressure"],
                     self.lambdas["contact"],
                     self.lambdas["com"]),
        )
        return {
            "pressure": self.lambdas["pressure"] * kld,
            "contact": self.lambdas["contact"] * bce,
            "com": self.lambdas["com"] * com,
            "total": total,
        }


# ---------------------------------------------------------------------------
# Demo / smoke test
# ---------------------------------------------------------------------------

if __name__ == "__main__":
    key = jax.random.PRNGKey(0)
    kp, kt, kc1, kc2, km1, km2, kmask = jax.random.split(key, 7)

    B = 8
    Hp, Wp = 40, 50          # pressure grid -> N_p = 2000 (ragged vs lane tiles)
    Nc = 21                  # per-joint contact logits (much smaller than pressure)

    # pressure: probability-like maps in (0,1], rows sum to 1
    pressure_pred = jax.nn.softmax(
        jax.random.normal(kp, (B, Hp, Wp), jnp.float32).reshape(B, -1), axis=-1
    ).reshape(B, Hp, Wp)
    pressure_tgt = jax.nn.softmax(
        jax.random.normal(kt, (B, Hp, Wp), jnp.float32).reshape(B, -1), axis=-1
    ).reshape(B, Hp, Wp)

    # contact: raw logits vs {0,1} targets
    contact_pred = jax.random.normal(kc1, (B, Nc), jnp.float32)
    contact_tgt = (jax.random.uniform(kc2, (B, Nc)) > 0.5).astype(jnp.float32)

    # com: (B, 4) = [x, y, z, valid_flag]; some rows invalid
    com_pred = jax.random.normal(km1, (B, 4), jnp.float32)
    com_xyz = jax.random.normal(km2, (B, 3), jnp.float32)
    com_valid = (jax.random.uniform(kmask, (B, 1)) > 0.3).astype(jnp.float32)
    com_tgt = jnp.concatenate([com_xyz, com_valid], axis=1)

    output = {"pressure": pressure_pred, "contact": contact_pred, "com": com_pred}
    target = {"pressure": pressure_tgt, "contact": contact_tgt, "com": com_tgt}

    loss_mod = PressureLossPallas()
    losses = loss_mod(output, target)
    losses = jax.tree_util.tree_map(jax.block_until_ready, losses)

    # Pure-JAX reference check (PyTorch semantics)
    pp2 = pressure_pred.reshape(B, -1)
    pt2 = pressure_tgt.reshape(B, -1)
    p = jnp.clip(pp2, EPS, 1.0)
    t = jnp.clip(pt2, EPS, 1.0)
    ref_kld = jnp.sum(t * (jnp.log(t) - jnp.log(p))) / B
    x, y = contact_pred, contact_tgt
    ref_bce = jnp.mean(jnp.maximum(x, 0) - x * y + jnp.log1p(jnp.exp(-jnp.abs(x))))
    m = com_tgt[:, 3] > 0
    ref_com = jnp.sum(m[:, None] * (com_pred[:, :3] - com_tgt[:, :3]) ** 2) / jnp.maximum(
        jnp.sum(m) * 3, 1
    )
    ref_total = 1.0 * ref_kld + 0.5 * ref_bce + 0.25 * ref_com

    assert jnp.allclose(losses["pressure"], 1.0 * ref_kld, rtol=1e-4, atol=1e-5)
    assert jnp.allclose(losses["contact"], 0.5 * ref_bce, rtol=1e-4, atol=1e-5)
    assert jnp.allclose(losses["com"], 0.25 * ref_com, rtol=1e-4, atol=1e-5)
    assert jnp.allclose(losses["total"], ref_total, rtol=1e-4, atol=1e-5)

    # Also exercise the multi-tile / per-stream gating / ragged-tail path by
    # forcing small blocks (several reduction steps per core).
    kld2, bce2, com2, tot2 = _fused_pressure_loss(
        pressure_pred, pressure_tgt, contact_pred, contact_tgt, com_pred, com_tgt,
        lambdas=(1.0, 0.5, 0.25), block_bytes=8 << 10)
    kld2 = jax.block_until_ready(kld2)
    assert jnp.allclose(kld2, ref_kld, rtol=1e-4, atol=1e-5)
    assert jnp.allclose(bce2, ref_bce, rtol=1e-4, atol=1e-5)
    assert jnp.allclose(com2, ref_com, rtol=1e-4, atol=1e-5)
    assert jnp.allclose(tot2, ref_total, rtol=1e-4, atol=1e-5)

    print("KERNEL_OK")
</pallas_src>

<mosaic_0001>
module attributes {stable_mosaic.version = 11 : i64} {
  func.func @kernel(%arg0: i32, %arg1: i32, %arg2: memref<8x1536xf32, #tpu.memory_space<vmem>>, %arg3: memref<8x1536xf32, #tpu.memory_space<vmem>>, %arg4: memref<8x21xf32, #tpu.memory_space<vmem>>, %arg5: memref<8x21xf32, #tpu.memory_space<vmem>>, %arg6: memref<8x4xf32, #tpu.memory_space<vmem>>, %arg7: memref<8x4xf32, #tpu.memory_space<vmem>>, %arg8: memref<1x8x128xf32, #tpu.memory_space<vmem>>, %arg9: memref<8x512xf32, #tpu.memory_space<vmem>>, %arg10: memref<8x21xf32, #tpu.memory_space<vmem>>) attributes {dimension_semantics = [#tpu.dimension_semantics<parallel>, #tpu.dimension_semantics<arbitrary>], iteration_bounds = array<i64: 2, 1>, scalar_prefetch = 0 : i64, scratch_operands = 2 : i64, tpu.core_type = #tpu.core_type<tc>, window_params = [{transform_indices = @transform_0, window_bounds = array<i64: 8, 1536>}, {transform_indices = @transform_1, window_bounds = array<i64: 8, 1536>}, {transform_indices = @transform_2, window_bounds = array<i64: 8, 21>}, {transform_indices = @transform_3, window_bounds = array<i64: 8, 21>}, {pipeline_mode = #tpu.pipeline_mode<synchronous>, transform_indices = @transform_4, window_bounds = array<i64: 8, 4>}, {pipeline_mode = #tpu.pipeline_mode<synchronous>, transform_indices = @transform_5, window_bounds = array<i64: 8, 4>}, {transform_indices = @transform_6, window_bounds = array<i64: 1, 8, 128>}]} {
    %c1_i32 = arith.constant 1 : i32
    %0 = arith.muli %arg0, %c1_i32 : i32
    %1 = arith.addi %0, %arg1 : i32
    %c0_i32 = arith.constant 0 : i32
    %2 = arith.cmpi eq, %arg1, %c0_i32 : i32
    %3 = arith.extui %2 : i1 to i32
    %c0_i32_0 = arith.constant 0 : i32
    %4 = arith.cmpi ne, %3, %c0_i32_0 : i32
    scf.if %4 {
      %cst_35 = arith.constant 0.000000e+00 : f32
      %81 = vector.broadcast %cst_35 : f32 to vector<8x512xf32>
      %c0_36 = arith.constant 0 : index
      %c0_37 = arith.constant 0 : index
      %82 = vector.load %arg9[%c0_36, %c0_37] : memref<8x512xf32, #tpu.memory_space<vmem>>, vector<8x512xf32>
      tpu.vector_store %arg9[%c0_36, %c0_37], %81 {strides = array<i32>} : memref<8x512xf32, #tpu.memory_space<vmem>>, vector<8x512xf32>,
      %cst_38 = arith.constant 0.000000e+00 : f32
      %83 = vector.broadcast %cst_38 : f32 to vector<8x21xf32>
      %c0_39 = arith.constant 0 : index
      %c0_40 = arith.constant 0 : index
      %84 = vector.load %arg10[%c0_39, %c0_40] : memref<8x21xf32, #tpu.memory_space<vmem>>, vector<8x21xf32>
      tpu.vector_store %arg10[%c0_39, %c0_40], %83 {strides = array<i32>} : memref<8x21xf32, #tpu.memory_space<vmem>>, vector<8x21xf32>,
    } else {
    }
    %c0 = arith.constant 0 : index
    %c0_1 = arith.constant 0 : index
    %5 = vector.load %arg9[%c0, %c0_1] : memref<8x512xf32, #tpu.memory_space<vmem>>, vector<8x512xf32>
    %c1536_i32 = arith.constant 1536 : i32
    %6 = arith.muli %1, %c1536_i32 : i32
    %7 = tpu.iota {dimensions = array<i32: 1>} : vector<8x512xi32>
    %c0_2 = arith.constant 0 : index
    %c0_3 = arith.constant 0 : index
    %8 = vector.load %arg2[%c0_2, %c0_3] : memref<8x1536xf32, #tpu.memory_space<vmem>>, vector<8x512xf32>
    %cst = arith.constant 9.99999993E-9 : f32
    %cst_4 = arith.constant 1.000000e+00 : f32
    %9 = vector.broadcast %cst : f32 to vector<8x512xf32>
    %10 = arith.maximumf %9, %8 : vector<8x512xf32>
    %11 = vector.broadcast %cst_4 : f32 to vector<8x512xf32>
    %12 = arith.minimumf %11, %10 : vector<8x512xf32>
    %c0_5 = arith.constant 0 : index
    %c0_6 = arith.constant 0 : index
    %13 = vector.load %arg3[%c0_5, %c0_6] : memref<8x1536xf32, #tpu.memory_space<vmem>>, vector<8x512xf32>
    %cst_7 = arith.constant 9.99999993E-9 : f32
    %cst_8 = arith.constant 1.000000e+00 : f32
    %14 = vector.broadcast %cst_7 : f32 to vector<8x512xf32>
    %15 = arith.maximumf %14, %13 : vector<8x512xf32>
    %16 = vector.broadcast %cst_8 : f32 to vector<8x512xf32>
    %17 = arith.minimumf %16, %15 : vector<8x512xf32>
    %18 = math.log %17 : vector<8x512xf32>
    %19 = math.log %12 : vector<8x512xf32>
    %20 = arith.subf %18, %19 : vector<8x512xf32>
    %21 = arith.mulf %17, %20 : vector<8x512xf32>
    %c0_i32_9 = arith.constant 0 : i32
    %22 = arith.addi %6, %c0_i32_9 : i32
    %23 = vector.broadcast %22 : i32 to vector<8x512xi32>
    %24 = arith.addi %7, %23 : vector<8x512xi32>
    %c2000_i32 = arith.constant 2000 : i32
    %25 = vector.broadcast %c2000_i32 : i32 to vector<8x512xi32>
    %26 = arith.cmpi slt, %24, %25 : vector<8x512xi32>
    %cst_10 = arith.constant 0.000000e+00 : f32
    %27 = vector.broadcast %cst_10 : f32 to vector<8x512xf32>
    %28 = arith.select %26, %21, %27 : vector<8x512xi1>, vector<8x512xf32>
    %29 = arith.addf %5, %28 : vector<8x512xf32>
    %c0_11 = arith.constant 0 : index
    %c512 = arith.constant 512 : index
    %30 = vector.load %arg2[%c0_11, %c512] : memref<8x1536xf32, #tpu.memory_space<vmem>>, vector<8x512xf32>
    %cst_12 = arith.constant 9.99999993E-9 : f32
    %cst_13 = arith.constant 1.000000e+00 : f32
    %31 = vector.broadcast %cst_12 : f32 to vector<8x512xf32>
    %32 = arith.maximumf %31, %30 : vector<8x512xf32>
    %33 = vector.broadcast %cst_13 : f32 to vector<8x512xf32>
    %34 = arith.minimumf %33, %32 : vector<8x512xf32>
    %c0_14 = arith.constant 0 : index
    %c512_15 = arith.constant 512 : index
    %35 = vector.load %arg3[%c0_14, %c512_15] : memref<8x1536xf32, #tpu.memory_space<vmem>>, vector<8x512xf32>
    %cst_16 = arith.constant 9.99999993E-9 : f32
    %cst_17 = arith.constant 1.000000e+00 : f32
    %36 = vector.broadcast %cst_16 : f32 to vector<8x512xf32>
    %37 = arith.maximumf %36, %35 : vector<8x512xf32>
    %38 = vector.broadcast %cst_17 : f32 to vector<8x512xf32>
    %39 = arith.minimumf %38, %37 : vector<8x512xf32>
    %40 = math.log %39 : vector<8x512xf32>
    %41 = math.log %34 : vector<8x512xf32>
    %42 = arith.subf %40, %41 : vector<8x512xf32>
    %43 = arith.mulf %39, %42 : vector<8x512xf32>
    %c512_i32 = arith.constant 512 : i32
    %44 = arith.addi %6, %c512_i32 : i32
    %45 = vector.broadcast %44 : i32 to vector<8x512xi32>
    %46 = arith.addi %7, %45 : vector<8x512xi32>
    %c2000_i32_18 = arith.constant 2000 : i32
    %47 = vector.broadcast %c2000_i32_18 : i32 to vector<8x512xi32>
    %48 = arith.cmpi slt, %46, %47 : vector<8x512xi32>
    %cst_19 = arith.constant 0.000000e+00 : f32
    %49 = vector.broadcast %cst_19 : f32 to vector<8x512xf32>
    %50 = arith.select %48, %43, %49 : vector<8x512xi1>, vector<8x512xf32>
    %51 = arith.addf %29, %50 : vector<8x512xf32>
    %c0_20 = arith.constant 0 : index
    %c1024 = arith.constant 1024 : index
    %52 = vector.load %arg2[%c0_20, %c1024] : memref<8x1536xf32, #tpu.memory_space<vmem>>, vector<8x512xf32>
    %cst_21 = arith.constant 9.99999993E-9 : f32
    %cst_22 = arith.constant 1.000000e+00 : f32
    %53 = vector.broadcast %cst_21 : f32 to vector<8x512xf32>
    %54 = arith.maximumf %53, %52 : vector<8x512xf32>
    %55 = vector.broadcast %cst_22 : f32 to vector<8x512xf32>
    %56 = arith.minimumf %55, %54 : vector<8x512xf32>
    %c0_23 = arith.constant 0 : index
    %c1024_24 = arith.constant 1024 : index
    %57 = vector.load %arg3[%c0_23, %c1024_24] : memref<8x1536xf32, #tpu.memory_space<vmem>>, vector<8x512xf32>
    %cst_25 = arith.constant 9.99999993E-9 : f32
    %cst_26 = arith.constant 1.000000e+00 : f32
    %58 = vector.broadcast %cst_25 : f32 to vector<8x512xf32>
    %59 = arith.maximumf %58, %57 : vector<8x512xf32>
    %60 = vector.broadcast %cst_26 : f32 to vector<8x512xf32>
    %61 = arith.minimumf %60, %59 : vector<8x512xf32>
    %62 = math.log %61 : vector<8x512xf32>
    %63 = math.log %56 : vector<8x512xf32>
    %64 = arith.subf %62, %63 : vector<8x512xf32>
    %65 = arith.mulf %61, %64 : vector<8x512xf32>
    %c1024_i32 = arith.constant 1024 : i32
    %66 = arith.addi %6, %c1024_i32 : i32
    %67 = vector.broadcast %66 : i32 to vector<8x512xi32>
    %68 = arith.addi %7, %67 : vector<8x512xi32>
    %c2000_i32_27 = arith.constant 2000 : i32
    %69 = vector.broadcast %c2000_i32_27 : i32 to vector<8x512xi32>
    %70 = arith.cmpi slt, %68, %69 : vector<8x512xi32>
    %cst_28 = arith.constant 0.000000e+00 : f32
    %71 = vector.broadcast %cst_28 : f32 to vector<8x512xf32>
    %72 = arith.select %70, %65, %71 : vector<8x512xi1>, vector<8x512xf32>
    %73 = arith.addf %51, %72 : vector<8x512xf32>
    %c0_29 = arith.constant 0 : index
    %c0_30 = arith.constant 0 : index
    %74 = vector.load %arg9[%c0_29, %c0_30] : memref<8x512xf32, #tpu.memory_space<vmem>>, vector<8x512xf32>
    tpu.vector_store %arg9[%c0_29, %c0_30], %73 {strides = array<i32>} : memref<8x512xf32, #tpu.memory_space<vmem>>, vector<8x512xf32>,
    %c1_i32_31 = arith.constant 1 : i32
    %75 = arith.cmpi slt, %1, %c1_i32_31 : i32
    %76 = arith.extui %75 : i1 to i32
    %c0_i32_32 = arith.constant 0 : i32
    %77 = arith.cmpi ne, %76, %c0_i32_32 : i32
    scf.if %77 {
      %c0_35 = arith.constant 0 : index
      %c0_36 = arith.constant 0 : index
      %81 = vector.load %arg10[%c0_35, %c0_36] : memref<8x21xf32, #tpu.memory_space<vmem>>, vector<8x21xf32>
      %c0_37 = arith.constant 0 : index
      %c0_38 = arith.constant 0 : index
      %82 = vector.load %arg4[%c0_37, %c0_38] : memref<8x21xf32, #tpu.memory_space<vmem>>, vector<8x21xf32>
      %c0_39 = arith.constant 0 : index
      %c0_40 = arith.constant 0 : index
      %83 = vector.load %arg5[%c0_39, %c0_40] : memref<8x21xf32, #tpu.memory_space<vmem>>, vector<8x21xf32>
      %cst_41 = arith.constant 0.000000e+00 : f32
      %84 = vector.broadcast %cst_41 : f32 to vector<8x21xf32>
      %85 = arith.maximumf %82, %84 : vector<8x21xf32>
      %86 = arith.mulf %82, %83 : vector<8x21xf32>
      %87 = arith.subf %85, %86 : vector<8x21xf32>
      %88 = math.absf %82 : vector<8x21xf32>
      %cst_42 = arith.constant 0.000000e+00 : f32
      %89 = vector.broadcast %cst_42 : f32 to vector<8x21xf32>
      %90 = arith.subf %89, %88 : vector<8x21xf32>
      %91 = math.exp %90 : vector<8x21xf32>
      %92 = math.log1p %91 : vector<8x21xf32>
      %93 = arith.addf %87, %92 : vector<8x21xf32>
      %94 = arith.addf %81, %93 : vector<8x21xf32>
      %c0_43 = arith.constant 0 : index
      %c0_44 = arith.constant 0 : index
      %95 = vector.load %arg10[%c0_43, %c0_44] : memref<8x21xf32, #tpu.memory_space<vmem>>, vector<8x21xf32>
      tpu.vector_store %arg10[%c0_43, %c0_44], %94 {strides = array<i32>} : memref<8x21xf32, #tpu.memory_space<vmem>>, vector<8x21xf32>,
    } else {
    }
    %c0_i32_33 = arith.constant 0 : i32
    %78 = arith.cmpi eq, %arg1, %c0_i32_33 : i32
    %79 = arith.extui %78 : i1 to i32
    %c0_i32_34 = arith.constant 0 : i32
    %80 = arith.cmpi ne, %79, %c0_i32_34 : i32
    scf.if %80 {
      %c0_35 = arith.constant 0 : index
      %c0_36 = arith.constant 0 : index
      %81 = vector.load %arg9[%c0_35, %c0_36] : memref<8x512xf32, #tpu.memory_space<vmem>>, vector<8x512xf32>
      %82 = vector.shape_cast %81 : vector<8x512xf32> to vector<1x8x512xf32>
      %cst_37 = arith.constant dense<0.000000e+00> : vector<1xf32>
      %83 = vector.multi_reduction <add>, %82, %cst_37 [1, 2] : vector<1x8x512xf32> to vector<1xf32>
      %84 = vector.shape_cast %83 : vector<1xf32> to vector<1x1x1xf32>
      %85 = vector.extract %84[0, 0, 0] : f32 from vector<1x1x1xf32>
      %c0_38 = arith.constant 0 : index
      %c0_39 = arith.constant 0 : index
      %86 = vector.load %arg10[%c0_38, %c0_39] : memref<8x21xf32, #tpu.memory_space<vmem>>, vector<8x21xf32>
      %87 = vector.shape_cast %86 : vector<8x21xf32> to vector<1x8x21xf32>
      %cst_40 = arith.constant dense<0.000000e+00> : vector<1xf32>
      %88 = vector.multi_reduction <add>, %87, %cst_40 [1, 2] : vector<1x8x21xf32> to vector<1xf32>
      %89 = vector.shape_cast %88 : vector<1xf32> to vector<1x1x1xf32>
      %90 = vector.extract %89[0, 0, 0] : f32 from vector<1x1x1xf32>
      %c0_41 = arith.constant 0 : index
      %c0_42 = arith.constant 0 : index
      %91 = vector.load %arg6[%c0_41, %c0_42] : memref<8x4xf32, #tpu.memory_space<vmem>>, vector<8x4xf32>
      %c0_43 = arith.constant 0 : index
      %c0_44 = arith.constant 0 : index
      %92 = vector.load %arg7[%c0_43, %c0_44] : memref<8x4xf32, #tpu.memory_space<vmem>>, vector<8x4xf32>
      %93 = vector.extract_strided_slice %92 {offsets = [0, 3], sizes = [8, 1], strides = [1, 1]} : vector<8x4xf32> to vector<8x1xf32>
      %cst_45 = arith.constant 0.000000e+00 : f32
      %94 = vector.broadcast %cst_45 : f32 to vector<8x1xf32>
      %95 = arith.cmpf ogt, %93, %94 : vector<8x1xf32>
      %96 = arith.extui %95 : vector<8x1xi1> to vector<8x1xi32>
      %97 = arith.sitofp %96 : vector<8x1xi32> to vector<8x1xf32>
      %98 = vector.extract_strided_slice %91 {offsets = [0, 0], sizes = [8, 3], strides = [1, 1]} : vector<8x4xf32> to vector<8x3xf32>
      %99 = vector.extract_strided_slice %92 {offsets = [0, 0], sizes = [8, 3], strides = [1, 1]} : vector<8x4xf32> to vector<8x3xf32>
      %100 = arith.subf %98, %99 : vector<8x3xf32>
      %101 = vector.broadcast %97 : vector<8x1xf32> to vector<8x3xf32>
      %102 = arith.mulf %100, %101 : vector<8x3xf32>
      %103 = vector.shape_cast %97 : vector<8x1xf32> to vector<1x8x1xf32>
      %cst_46 = arith.constant dense<0.000000e+00> : vector<1xf32>
      %104 = vector.multi_reduction <add>, %103, %cst_46 [1, 2] : vector<1x8x1xf32> to vector<1xf32>
      %105 = vector.shape_cast %104 : vector<1xf32> to vector<1x1x1xf32>
      %106 = vector.extract %105[0, 0, 0] : f32 from vector<1x1x1xf32>
      %cst_47 = arith.constant 3.000000e+00 : f32
      %107 = arith.mulf %106, %cst_47 : f32
      %108 = arith.mulf %102, %102 : vector<8x3xf32>
      %109 = vector.shape_cast %108 : vector<8x3xf32> to vector<1x8x3xf32>
      %cst_48 = arith.constant dense<0.000000e+00> : vector<1xf32>
      %110 = vector.multi_reduction <add>, %109, %cst_48 [1, 2] : vector<1x8x3xf32> to vector<1xf32>
      %111 = vector.shape_cast %110 : vector<1xf32> to vector<1x1x1xf32>
      %112 = vector.extract %111[0, 0, 0] : f32 from vector<1x1x1xf32>
      %cst_49 = arith.constant 0.000000e+00 : f32
      %113 = arith.cmpf ogt, %107, %cst_49 : f32
      %cst_50 = arith.constant 1.000000e+00 : f32
      %114 = arith.maximumf %107, %cst_50 : f32
      %115 = arith.divf %112, %114 : f32
      %cst_51 = arith.constant 0.000000e+00 : f32
      %116 = arith.select %113, %115, %cst_51 : f32
      %117 = tpu.iota {dimensions = array<i32: 2>} : vector<1x8x128xi32>
      %c0_i32_52 = arith.constant 0 : i32
      %118 = vector.broadcast %c0_i32_52 : i32 to vector<1x8x128xi32>
      %119 = arith.cmpi eq, %117, %118 : vector<1x8x128xi32>
      %cst_53 = arith.constant 0.000000e+00 : f32
      %120 = vector.broadcast %85 : f32 to vector<1x8x128xf32>
      %121 = vector.broadcast %cst_53 : f32 to vector<1x8x128xf32>
      %122 = arith.select %119, %120, %121 : vector<1x8x128xi1>, vector<1x8x128xf32>
      %c1_i32_54 = arith.constant 1 : i32
      %123 = vector.broadcast %c1_i32_54 : i32 to vector<1x8x128xi32>
      %124 = arith.cmpi eq, %117, %123 : vector<1x8x128xi32>
      %cst_55 = arith.constant 0.000000e+00 : f32
      %125 = vector.broadcast %90 : f32 to vector<1x8x128xf32>
      %126 = vector.broadcast %cst_55 : f32 to vector<1x8x128xf32>
      %127 = arith.select %124, %125, %126 : vector<1x8x128xi1>, vector<1x8x128xf32>
      %128 = arith.addf %122, %127 : vector<1x8x128xf32>
      %c2_i32 = arith.constant 2 : i32
      %129 = vector.broadcast %c2_i32 : i32 to vector<1x8x128xi32>
      %130 = arith.cmpi eq, %117, %129 : vector<1x8x128xi32>
      %cst_56 = arith.constant 0.000000e+00 : f32
      %131 = vector.broadcast %116 : f32 to vector<1x8x128xf32>
      %132 = vector.broadcast %cst_56 : f32 to vector<1x8x128xf32>
      %133 = arith.select %130, %131, %132 : vector<1x8x128xi1>, vector<1x8x128xf32>
      %134 = arith.addf %128, %133 : vector<1x8x128xf32>
      %c0_57 = arith.constant 0 : index
      %c0_58 = arith.constant 0 : index
      %c0_59 = arith.constant 0 : index
      %135 = vector.load %arg8[%c0_57, %c0_58, %c0_59] : memref<1x8x128xf32, #tpu.memory_space<vmem>>, vector<1x8x128xf32>
      tpu.vector_store %arg8[%c0_57, %c0_58, %c0_59], %134 {strides = array<i32>} : memref<1x8x128xf32, #tpu.memory_space<vmem>>, vector<1x8x128xf32>,
    } else {
    }
    return
  }
  func.func @transform_0(%arg0: i32, %arg1: i32) -> (i32, i32) {
    %c1_i32 = arith.constant 1 : i32
    %0 = arith.muli %arg0, %c1_i32 : i32
    %1 = arith.addi %0, %arg1 : i32
    %c1_i32_0 = arith.constant 1 : i32
    %2 = arith.minsi %1, %c1_i32_0 : i32
    %c0_i32 = arith.constant 0 : i32
    %c0_i32_1 = arith.constant 0 : i32
    return %c0_i32, %2 : i32, i32
  }
  func.func @transform_1(%arg0: i32, %arg1: i32) -> (i32, i32) {
    %c1_i32 = arith.constant 1 : i32
    %0 = arith.muli %arg0, %c1_i32 : i32
    %1 = arith.addi %0, %arg1 : i32
    %c1_i32_0 = arith.constant 1 : i32
    %2 = arith.minsi %1, %c1_i32_0 : i32
    %c0_i32 = arith.constant 0 : i32
    %c0_i32_1 = arith.constant 0 : i32
    return %c0_i32, %2 : i32, i32
  }
  func.func @transform_2(%arg0: i32, %arg1: i32) -> (i32, i32) {
    %c1_i32 = arith.constant 1 : i32
    %0 = arith.muli %arg0, %c1_i32 : i32
    %1 = arith.addi %0, %arg1 : i32
    %c0_i32 = arith.constant 0 : i32
    %2 = arith.minsi %1, %c0_i32 : i32
    %c0_i32_0 = arith.constant 0 : i32
    %c0_i32_1 = arith.constant 0 : i32
    return %c0_i32_0, %2 : i32, i32
  }
  func.func @transform_3(%arg0: i32, %arg1: i32) -> (i32, i32) {
    %c1_i32 = arith.constant 1 : i32
    %0 = arith.muli %arg0, %c1_i32 : i32
    %1 = arith.addi %0, %arg1 : i32
    %c0_i32 = arith.constant 0 : i32
    %2 = arith.minsi %1, %c0_i32 : i32
    %c0_i32_0 = arith.constant 0 : i32
    %c0_i32_1 = arith.constant 0 : i32
    return %c0_i32_0, %2 : i32, i32
  }
  func.func @transform_4(%arg0: i32, %arg1: i32) -> (i32, i32) {
    %c0_i32 = arith.constant 0 : i32
    %c0_i32_0 = arith.constant 0 : i32
    %c0_i32_1 = arith.constant 0 : i32
    return %c0_i32, %c0_i32_0 : i32, i32
  }
  func.func @transform_5(%arg0: i32, %arg1: i32) -> (i32, i32) {
    %c0_i32 = arith.constant 0 : i32
    %c0_i32_0 = arith.constant 0 : i32
    %c0_i32_1 = arith.constant 0 : i32
    return %c0_i32, %c0_i32_0 : i32, i32
  }
  func.func @transform_6(%arg0: i32, %arg1: i32) -> (i32, i32, i32) {
    %c0_i32 = arith.constant 0 : i32
    %c0_i32_0 = arith.constant 0 : i32
    %c0_i32_1 = arith.constant 0 : i32
    return %arg0, %c0_i32, %c0_i32_0 : i32, i32, i32
  }
}

</mosaic_0001>

<bundles_post_ra>
// kernel: _fused_pressure_loss.1
= control target key start
LH: loop header
LB: loop body
LE: loop exit
PB: predicated region body
PF: predicated region fallthrough
CT: control target
= control target key end

     0   :  { %s1069_s21 = smov 0   ;;  %s1071_s22 = smov 0   ;;  %s1297_s0 = inlined_call_operand.vmem [shape: f32[8,2000], index: 0, kind: input, shape index: {}]   ;;  %s1298_s1 = inlined_call_operand.vmem [shape: f32[8,2000], index: 1, kind: input, shape index: {}]   ;;  %s1299_s2 = inlined_call_operand.vmem [shape: f32[8,21], index: 2, kind: input, shape index: {}]   ;;  %s1300_s3 = inlined_call_operand.vmem [shape: f32[8,21], index: 3, kind: input, shape index: {}]   ;;  %s1301_s4 = inlined_call_operand.vmem [shape: f32[8,4], index: 4, kind: input, shape index: {}]   ;;  %s1302_s5 = inlined_call_operand.vmem [shape: f32[8,4], index: 5, kind: input, shape index: {}]   ;;  %s1303_s6 = inlined_call_operand.vmem [shape: f32[2,8,128], index: 6, kind: output, shape index: {}]  }
   0x1   :  { %s1073_s23 = smov 0  }
   0x2 LB: > { %s28_s24 = sadd.s32 1, %s1024_s22  ;;  %p896_p0 = scmp.ge.s32.totalorder %s1028_s23, 1  ;;  %s1028_s23 = sphi %s1073_s23, %s16_s23   ;;  %s1024_s22 = sphi %s1071_s22, %s1305_s22   ;;  %s1020_s21 = sphi %s1069_s21, %s1304_s21  }
   0x3   : > { %p30_p1 = scmp.ge.s32.totalorder %s28_s24, 2  ;;  %p318_p2 = scmp.lt.s32.totalorder %s1028_s23, 3 }
   0x5   : > { %s1307_s24 = smov (%p30_p1, %s28_s24), 0  ;;  %p319_p3 = pnand %p896_p0, %p318_p2 }
   0x6   : > { %p421_p4 = scmp.lt.s32.totalorder (!%p319_p3), %s1020_s21, 0  ;;  %p381_p5 = scmp.lt.s32.totalorder (!%p319_p3), %s1020_s21, 1 }
   0x7   : > { %322 = sbr.rel (%p319_p3) target bundleno = 481 (0x1e1), region = 44  ;;  %p908_p7 = scmp.ge.s32.totalorder (!%p319_p3), %s1020_s21, 1 }
   0x8   : > { %s1094_s25 = smul.u32 (!%p319_p3), 1536, %s1020_s21 }
   0xa   : > { %s578_s16 = sadd.s32 (!%p319_p3), 512, %s1094_s25  ;;  %s644_s18 = sadd.s32 (!%p319_p3), 1024, %s1094_s25 }
   0xc   : > { %vm453_vm0 = vcmask 171008   ;;  %v1030_v0 = vmov 0.0   ;;  %s422_s26 = scalar_select %p421_p4, %s1020_s21, 0  ;;  %v460_v1 = vlaneseq  ;;  %v1129_v4 = vstv %s1094_s25 }
   0xd   : > { %454 = vst.msk [vmem:[#allocation3] sm:$0xff] %vm453_vm0, %v1030_v0  ;;  %s382_s27 = scalar_select %p381_p5, %s1020_s21, 1  ;;  %v1131_v5 = vstv %s578_s16  ;;  %v1150_v18 = vstv %s644_s18 }
   0xe   : > { %s1309_s26 = smov (!%p421_p4, %s422_s26), 0  ;;  %v1113_v2 = vand.u32 127, %v460_v1 }
   0xf   : > { %s383_s28 = smul.u32 12, %s382_s27  ;;  %s907_s29 = sshll.u32 %s382_s27, 3 }
  0x10   : > { %s902_s30 = sshll.u32 %s1309_s26, 3  ;;  %s1101_s9 = scalar_lea.vmem %s1303_s6, %s907_s29  ;;  %v462_v3 = vadd.s32 128, %v1113_v2  ;;  %v1137_v9 = vadd.s32 256, %v1113_v2  ;;  %v1141_v13 = vadd.s32 %v1129_v4, %v1113_v2  ;;  %v1146_v15 = vadd.s32 %v1131_v5, %v1113_v2 }
  0x11   : > { %s1106_s12 = scalar_lea.vmem %s1299_s2, %s902_s30  ;;  %s1111_s15 = scalar_lea.vmem %s1300_s3, %s902_s30  ;;  %v1166_v30 = vadd.s32 %v1150_v18, %v1113_v2  ;;  %v1194_v52 = vadd.s32 384, %v1113_v2 }
  0x12   : > { %p388_p6 = scmp.lt.s32.totalorder %s383_s28, 15  ;;  %v1153_v19 = vadd.s32 %v1129_v4, %v462_v3  ;;  %v1159_v28 = vadd.s32 %v1131_v5, %v462_v3  ;;  %v1173_v34 = vadd.s32 %v1129_v4, %v1137_v9  ;;  %v1180_v39 = vadd.s32 %v1150_v18, %v462_v3 }
  0x13   : > { %vm518_vm1 = vcmp.lt.s32.totalorder %v1141_v13, 2000  ;;  %vm584_vm2 = vcmp.lt.s32.totalorder %v1146_v15, 2000  ;;  %vm650_vm3 = vcmp.lt.s32.totalorder %v1166_v30, 2000 }
  0x14   : > { %s1311_s28 = smov (!%p388_p6, %s383_s28), 15  ;;  %vm519_vm4 = vcmp.lt.s32.totalorder %v1153_v19, 2000  ;;  %vm585_vm5 = vcmp.lt.s32.totalorder %v1159_v28, 2000  ;;  %vm651_vm6 = vcmp.lt.s32.totalorder %v1180_v39, 2000  ;;  %vm520_vm7 = vcmp.lt.s32.totalorder %v1173_v34, 2000 }
  0x15   : > { %s897_s17 = sshll.u32 %s1311_s28, 3  ;;  %v648_v39 = vadd.s32 %v1150_v18, %v1137_v9 }
  0x16   : > { %s1121_s26 = scalar_lea.vmem %s1297_s0, %s897_s17  ;;  %s1126_s30 = scalar_lea.vmem %s1298_s1, %s897_s17 }
  0x17   : > { %v465_v6 = vld [vmem:[%s1121_s26] sm:$0xff]  ;;  %v466_v24 = vld [vmem:[%s1121_s26 + $0x8] sm:$0xff]  ;;  %v467_v40 = vld [vmem:[%s1121_s26 + $0x10] sm:$0xff]  ;;  %vm652_vm9 = vcmp.lt.s32.totalorder %v648_v39, 2000 }
  0x18   : > { %v477_v7 = vld [vmem:[%s1126_s30] sm:$0xff]  ;;  %v469_v10 = vmax.f32 %v465_v6, 1e-08  ;;  %v470_v27 = vmax.f32 %v466_v24, 1e-08  ;;  %v478_v31 = vld [vmem:[%s1126_s30 + $0x8] sm:$0xff] }
  0x19   : > { %v530_v8 = vld [vmem:[%s1121_s26 + $0x20] sm:$0xff]  ;;  %v481_v11 = vmax.f32 %v477_v7, 1e-08  ;;  %v531_v32 = vld [vmem:[%s1121_s26 + $0x28] sm:$0xff]  ;;  %v482_v41 = vmax.f32 %v478_v31, 1e-08 }
  0x1a   : > { %v534_v12 = vmax.f32 %v530_v8, 1e-08  ;;  %v542_v14 = vld [vmem:[%s1126_s30 + $0x20] sm:$0xff]  ;;  %v473_v20 = vmin.f32 %v469_v10, 1.0  ;;  %v543_v33 = vld [vmem:[%s1126_s30 + $0x28] sm:$0xff]  ;;  %v474_v44 = vmin.f32 %v470_v27, 1.0  ;;  %v1208_v10 = vadd.s32 %v1131_v5, %v1137_v9 }
  0x1b   : > { %v596_v16 = vld [vmem:[%s1121_s26 + $0x40] sm:$0xff]  ;;  %v1155_v21 = vmin.f32 %v481_v11, 1.0  ;;  %v546_v23 = vmax.f32 %v542_v14, 1e-08  ;;  %v597_v37 = vld [vmem:[%s1121_s26 + $0x48] sm:$0xff]  ;;  %v1186_v47 = vmin.f32 %v482_v41, 1.0 }
  0x1c   : > { %v608_v17 = vld [vmem:[%s1126_s30 + $0x40] sm:$0xff]  ;;  %v538_v22 = vmin.f32 %v534_v12, 1.0  ;;  %v600_v25 = vmax.f32 %v596_v16, 1e-08  ;;  %v609_v38 = vld [vmem:[%s1126_s30 + $0x48] sm:$0xff]  ;;  %v479_v49 = vld [vmem:[%s1126_s30 + $0x10] sm:$0xff] }
  0x1d   : > { %v612_v26 = vmax.f32 %v608_v17, 1e-08  ;;  %950 = vlog2.f32 %v1155_v21  ;;  %v1162_v29 = vmin.f32 %v546_v23, 1.0  ;;  %v535_v42 = vmax.f32 %v531_v32, 1e-08  ;;  %v532_v50 = vld [vmem:[%s1121_s26 + $0x30] sm:$0xff] }
  0x1e   : > { %952 = vlog2.f32 %v473_v20  ;;  %v604_v35 = vmin.f32 %v600_v25, 1.0  ;;  %v547_v43 = vmax.f32 %v543_v33, 1e-08  ;;  %v601_v45 = vmax.f32 %v597_v37, 1e-08  ;;  %v544_v51 = vld [vmem:[%s1126_s30 + $0x30] sm:$0xff] }
  0x1f   : > { %v1175_v36 = vmin.f32 %v612_v26, 1.0  ;;  %954 = vlog2.f32 %v1162_v29  ;;  %v613_v46 = vmax.f32 %v609_v38, 1e-08  ;;  %v539_v53 = vmin.f32 %v535_v42, 1.0  ;;  %v598_v56 = vld [vmem:[%s1121_s26 + $0x50] sm:$0xff]  ;;  %v468_v24 = vld [vmem:[%s1121_s26 + $0x18] sm:$0xff] }
  0x20   : > { %956 = vlog2.f32 %v538_v22  ;;  %v1188_v48 = vmin.f32 %v547_v43, 1.0  ;;  %v605_v54 = vmin.f32 %v601_v45, 1.0  ;;  %v471_v55 = vmax.f32 %v467_v40, 1e-08  ;;  %v610_v61 = vld [vmem:[%s1126_s30 + $0x50] sm:$0xff]  ;;  %v480_v38 = vld [vmem:[%s1126_s30 + $0x18] sm:$0xff] }
  0x21   : > { %958 = vlog2.f32 %v1175_v36  ;;  %v1199_v58 = vmin.f32 %v613_v46, 1.0  ;;  %v483_v59 = vmax.f32 %v479_v49, 1e-08  ;;  %v536_v60 = vmax.f32 %v532_v50, 1e-08  ;;  %v533_v15 = vld [vmem:[%s1121_s26 + $0x38] sm:$0xff] }
  0x22   : > { %960 = vlog2.f32 %v604_v35  ;;  %v548_v1 = vmax.f32 %v544_v51, 1e-08  ;;  %v602_v3 = vmax.f32 %v598_v56, 1e-08  ;;  %v475_v14 = vmin.f32 %v471_v55, 1.0  ;;  %v611_v28 = vld [vmem:[%s1126_s30 + $0x58] sm:$0xff] }
  0x23   : > { %v951_v57 = vpop.eup %950  ;;  %962 = vlog2.f32 %v1186_v47  ;;  %v1204_v8 = vmin.f32 %v483_v59, 1.0  ;;  %v614_v16 = vmax.f32 %v610_v61, 1e-08  ;;  %v540_v23 = vmin.f32 %v536_v60, 1.0 }
  0x24   : > { %v953_v62 = vpop.eup %952  ;;  %v490_v63 = vmul.f32 0.6931472, %v951_v57  ;;  %964 = vlog2.f32 %v474_v44  ;;  %v1214_v27 = vmin.f32 %v548_v1, 1.0  ;;  %v606_v31 = vmin.f32 %v602_v3, 1.0 }
  0x25   : > { %v955_v6 = vpop.eup %954  ;;  %v498_v7 = vmul.f32 0.6931472, %v953_v62  ;;  %966 = vlog2.f32 %v1188_v48  ;;  %v1220_v42 = vmin.f32 %v614_v16, 1.0  ;;  %v472_v43 = vmax.f32 %v468_v24, 1e-08 }
  0x26   : > { %v957_v11 = vpop.eup %956  ;;  %v555_v12 = vmul.f32 0.6931472, %v955_v6  ;;  %968 = vlog2.f32 %v539_v53  ;;  %v484_v53 = vmax.f32 %v480_v38, 1e-08  ;;  %vm586_vm8 = vcmp.lt.s32.totalorder %v1208_v10, 2000 }
  0x27   : > { %v959_v17 = vpop.eup %958  ;;  %v505_v20 = vsub.f32 %v490_v63, %v498_v7  ;;  %v563_v22 = vmul.f32 0.6931472, %v957_v11  ;;  %970 = vlog2.f32 %v1199_v58  ;;  %v476_v61 = vmin.f32 %v472_v43, 1.0  ;;  %v545_v7 = vld [vmem:[%s1126_s30 + $0x38] sm:$0xff] }
  0x28   : > { %v961_v25 = vpop.eup %960  ;;  %v621_v26 = vmul.f32 0.6931472, %v959_v17  ;;  %972 = vlog2.f32 %v605_v54 }
  0x29   : > { %v963_v32 = vpop.eup %962  ;;  %v509_v33 = vmul.f32 %v505_v20, %v1155_v21  ;;  %v570_v35 = vsub.f32 %v555_v12, %v563_v22  ;;  %v629_v37 = vmul.f32 0.6931472, %v961_v25  ;;  %974 = vlog2.f32 %v1204_v8 }
  0x2a   : > { %v965_v40 = vpop.eup %964  ;;  %v492_v41 = vmul.f32 0.6931472, %v963_v32  ;;  %976 = vlog2.f32 %v475_v14  ;;  %v1236_v14 = vmin.f32 %v484_v53, 1.0  ;;  %v537_v22 = vmax.f32 %v533_v15, 1e-08 }
  0x2b   : > { %v967_v44 = vpop.eup %966  ;;  %v522_v45 = vsel %vm518_vm1, %v509_v33, 0.0  ;;  %v574_v46 = vmul.f32 %v570_v35, %v1162_v29  ;;  %v636_v21 = vsub.f32 %v621_v26, %v629_v37  ;;  %v500_v49 = vmul.f32 0.6931472, %v965_v40  ;;  %v599_v33 = vld [vmem:[%s1121_s26 + $0x58] sm:$0xff] }
  0x2c   : > { %v969_v50 = vpop.eup %968  ;;  %v557_v51 = vmul.f32 0.6931472, %v967_v44  ;;  %978 = vlog2.f32 %v1214_v27 }
  0x2d   : > { %v971_v54 = vpop.eup %970  ;;  %v588_v55 = vsel %vm584_vm2, %v574_v46, 0.0  ;;  %v640_v13 = vmul.f32 %v636_v21, %v1175_v36  ;;  %v506_v56 = vsub.f32 %v492_v41, %v500_v49  ;;  %v565_v57 = vmul.f32 0.6931472, %v969_v50 }
  0x2e   : > { %v973_v29 = vpop.eup %972  ;;  %v592_v59 = vadd.f32 %v588_v55, %v522_v45  ;;  %v623_v60 = vmul.f32 0.6931472, %v971_v54  ;;  %980 = vlog2.f32 %v540_v23  ;;  %v549_v23 = vmax.f32 %v545_v7, 1e-08 }
  0x2f   : > { %v975_v62 = vpop.eup %974  ;;  %v654_v63 = vsel %vm650_vm3, %v640_v13, 0.0  ;;  %v510_v1 = vmul.f32 %v506_v56, %v1186_v47  ;;  %v571_v3 = vsub.f32 %v557_v51, %v565_v57  ;;  %v631_v6 = vmul.f32 0.6931472, %v973_v29 }
  0x30   : > { %v977_v11 = vpop.eup %976  ;;  %v658_v12 = vadd.f32 %v654_v63, %v592_v59  ;;  %v494_v36 = vmul.f32 0.6931472, %v975_v62  ;;  %982 = vlog2.f32 %v1220_v42  ;;  %v553_v37 = vmin.f32 %v549_v23, 1.0 }
  0x31   : > { %v523_v16 = vsel %vm519_vm4, %v510_v1, 0.0  ;;  %v575_v30 = vmul.f32 %v571_v3, %v1188_v48  ;;  %v637_v17 = vsub.f32 %v623_v60, %v631_v6  ;;  %v502_v20 = vmul.f32 0.6931472, %v977_v11 }
  0x32   : > { %v979_v47 = vpop.eup %978  ;;  %662 = vst [vmem:[#allocation2 + $0x10] sm:$0xff] %v658_v12  ;;  %984 = vlog2.f32 %v606_v31  ;;  %v541_v48 = vmin.f32 %v537_v22, 1.0  ;;  %v615_v49 = vmax.f32 %v611_v28, 1e-08  ;;  %v517_v57 = vadd.s32 %v1129_v4, %v1194_v52 }
  0x33   : > { %v589_v24 = vsel %vm585_vm5, %v575_v30, 0.0  ;;  %v641_v25 = vmul.f32 %v637_v17, %v1199_v58  ;;  %v507_v26 = vsub.f32 %v494_v36, %v502_v20  ;;  %v559_v32 = vmul.f32 0.6931472, %v979_v47 }
  0x34   : > { %v981_v19 = vpop.eup %980  ;;  %v593_v35 = vadd.f32 %v589_v24, %v523_v16  ;;  %986 = vlog2.f32 %v1236_v14  ;;  %v603_v58 = vmax.f32 %v599_v33, 1e-08  ;;  %v619_v54 = vmin.f32 %v615_v49, 1.0 }
  0x35   : > { %v655_v31 = vsel %vm651_vm6, %v641_v25, 0.0  ;;  %v511_v38 = vmul.f32 %v507_v26, %v1204_v8  ;;  %v567_v40 = vmul.f32 0.6931472, %v981_v19  ;;  %988 = vlog2.f32 %v476_v61 }
  0x36   : > { %v983_v41 = vpop.eup %982  ;;  %v659_v43 = vadd.f32 %v655_v31, %v593_v35  ;;  %990 = vlog2.f32 %v553_v37  ;;  %v607_v8 = vmin.f32 %v603_v58, 1.0  ;;  %v583_v62 = vadd.s32 %v1131_v5, %v1194_v52 }
  0x37   : > { %v524_v44 = vsel %vm520_vm7, %v511_v38, 0.0  ;;  %v572_v45 = vsub.f32 %v559_v32, %v567_v40  ;;  %v625_v46 = vmul.f32 0.6931472, %v983_v41  ;;  %992 = vlog2.f32 %v541_v48 }
  0x38   : > { %v985_v21 = vpop.eup %984  ;;  %663 = vst [vmem:[#allocation2] sm:$0xff] %v659_v43  ;;  %994 = vlog2.f32 %v607_v8  ;;  %vm521_vm10 = vcmp.lt.s32.totalorder %v517_v57, 2000  ;;  %vm587_vm11 = vcmp.lt.s32.totalorder %v583_v62, 2000 }
  0x39   : > { %v576_v50 = vmul.f32 %v572_v45, %v1214_v27  ;;  %v633_v51 = vmul.f32 0.6931472, %v985_v21  ;;  %996 = vlog2.f32 %v619_v54 }
  0x3a   : > { %v987_v53 = vpop.eup %986 }
  0x3b   : > { %v989_v55 = vpop.eup %988  ;;  %v590_v34 = vsel %vm586_vm8, %v576_v50, 0.0  ;;  %v638_v13 = vsub.f32 %v625_v46, %v633_v51  ;;  %v496_v56 = vmul.f32 0.6931472, %v987_v53 }
  0x3c   : > { %v991_v29 = vpop.eup %990  ;;  %v594_v59 = vadd.f32 %v590_v34, %v524_v44  ;;  %v504_v9 = vmul.f32 0.6931472, %v989_v55 }
  0x3d   : > { %v993_v60 = vpop.eup %992  ;;  %v642_v27 = vmul.f32 %v638_v13, %v1220_v42  ;;  %v561_v61 = vmul.f32 0.6931472, %v991_v29  ;;  %v649_v42 = vadd.s32 %v1150_v18, %v1194_v52 }
  0x3e   : > { %v508_v63 = vsub.f32 %v496_v56, %v504_v9  ;;  %v569_v10 = vmul.f32 0.6931472, %v993_v60  ;;  %v995_v3 = vpop.eup %994 }
  0x3f   : > { %v656_v1 = vsel %vm652_vm9, %v642_v27, 0.0  ;;  %v635_v7 = vmul.f32 0.6931472, %v995_v3  ;;  %v997_v11 = vpop.eup %996  ;;  %vm653_vm12 = vcmp.lt.s32.totalorder %v649_v42, 2000 }
  0x40   : > { %v660_v6 = vadd.f32 %v656_v1, %v594_v59  ;;  %v512_v4 = vmul.f32 %v508_v63, %v1236_v14  ;;  %v573_v15 = vsub.f32 %v561_v61, %v569_v10  ;;  %v627_v16 = vmul.f32 0.6931472, %v997_v11 }
  0x42   : > { %664 = vst [vmem:[#allocation2 + $0x18] sm:$0xff] %v660_v6  ;;  %v525_v12 = vsel %vm521_vm10, %v512_v4, 0.0  ;;  %v577_v36 = vmul.f32 %v573_v15, %v553_v37  ;;  %v639_v30 = vsub.f32 %v627_v16, %v635_v7 }
  0x44   : > { %v591_v5 = vsel %vm587_vm11, %v577_v36, 0.0  ;;  %v643_v20 = vmul.f32 %v639_v30, %v619_v54 }
  0x45   : > { %v595_v17 = vadd.f32 %v591_v5, %v525_v12  ;;  %669 = sbr.rel (%p908_p7) target bundleno = 105 (0x69), region = 52 }
  0x46   : > { %v657_v47 = vsel %vm653_vm12, %v643_v20, 0.0 }
  0x47   : > { %v661_v22 = vadd.f32 %v657_v47, %v595_v17 }
  0x49   : > { %665 = vst [vmem:[#allocation2 + $0x8] sm:$0xff] %v661_v22 }
  0x4a   : > { %v671_v14 = vld [vmem:[%s1106_s12] sm:$0xff] }
  0x4b   : > { %v676_v23 = vand.u32 2147483647, %v671_v14  ;;  %v672_v32 = vld [vmem:[%s1111_s15] sm:$0xff]  ;;  %v673_v19 = vmax.f32 %v671_v14, 0.0 }
  0x4c   : > { %v674_v35 = vmul.f32 %v672_v32, %v671_v14  ;;  %v670_v28 = vld [vmem:[#allocation3] sm:$0xff] }
  0x4d   : > { %v677_v24 = vsub.f32 0.0, %v676_v23 }
  0x4e   : > { %v675_v38 = vsub.f32 %v673_v19, %v674_v35 }
  0x4f   : > { %v678_v25 = vmul.f32 1.442695, %v677_v24 }
  0x51   : > { %998 = vpow2.f32 %v678_v25 }
  0x57   : > { %v999_v18 = vpop.eup %998 }
  0x58   : > { %v680_v52 = vadd.f32 1.0, %v999_v18  ;;  %v683_v26 = vmul.f32 -0.5, %v999_v18  ;;  %v686_v48 = vand.u32 2147483647, %v999_v18 }
  0x5a   : > { %1000 = vlog2.f32 %v680_v52  ;;  %v684_v33 = vadd.f32 1.0, %v683_v26  ;;  %vm687_vm13 = vcmp.lt.f32.partialorder %v686_v48, 0.0004427343 }
  0x5c   : > { %v685_v37 = vmul.f32 %v999_v18, %v684_v33 }
  0x60   : > { %v1001_v31 = vpop.eup %1000 }
  0x61   : > { %v682_v40 = vmul.f32 0.6931472, %v1001_v31 }
  0x63   : > { %v688_v41 = vsel %vm687_vm13, %v685_v37, %v682_v40 }
  0x64   : > { %v689_v43 = vadd.f32 %v688_v41, %v675_v38 }
  0x66   : > { %v690_v58 = vadd.f32 %v689_v43, %v670_v28 }
  0x68   : > { %692 = vst.msk [vmem:[#allocation3] sm:$0xff] %vm453_vm0, %v690_v58 }
  0x69 PF: > { %v725_v44 = vld [vmem:[%s1302_s5] sm:$0xff]  ;;  %v1031_v46 = vmov 3   ;;  %s1032_s28 = smov 125   ;;  %v696_v8 = vld [vmem:[#allocation2 + $0x10] sm:$0xff]  ;;  %v698_v51 = vld [vmem:[#allocation2 + $0x18] sm:$0xff]  ;;  %vm752_vm15 = vcmask 23552  }
  0x6a   : > { %vm726_vm14 = vcmp.gt.f32.partialorder %v725_v44, 0.0  ;;  %1002 = vset.pattern.permute.xlu2 %v1031_v46  ;;  %1003 = vset.pattern.permute.xlu0 %v1031_v46  ;;  %v697_v49 = vld [vmem:[#allocation2] sm:$0xff]  ;;  %s1033_s14 = smov 1.0   ;;  %vm783_vm5 = vcmp.eq.s32.totalorder %v1113_v2, 0  ;;  %vm786_vm6 = vcmp.eq.s32.totalorder %v1113_v2, 1  ;;  %vm790_vm7 = vcmp.eq.s32.totalorder %v1113_v2, 2 }
  0x6b   : > { %v909_v39 = vsel %vm726_vm14, 1.0, %v1030_v0  ;;  %v700_v50 = vadd.f32 %v697_v49, %v696_v8  ;;  %v724_v34 = vld [vmem:[%s1301_s4] sm:$0xff] }
  0x6c   : > { %736 = vrot.lane.b32.xlu0 %v909_v39, %s1032_s28  ;;  %732 = vperm.xlu2 %1002, %v909_v39   ;;  %v729_v13 = vsub.f32 %v724_v34, %v725_v44 }
  0x6d   : > { %v701_v53 = vadd.f32 %v700_v50, %v698_v51 }
  0x6f   : > { %v712_v45 = vld [vmem:[#allocation3] sm:$0xff]  ;;  %v699_v54 = vld [vmem:[#allocation2 + $0x8] sm:$0xff] }
  0x70   : > { %v714_v21 = vsel %vm453_vm0, %v712_v45, 0.0  ;;  %v702_v55 = vadd.f32 %v701_v53, %v699_v54  ;;  %vm739_vm0 = vcmask 7168  }
  0x71   : > { %715 = vadd.xlane.f32.xlu1 %v714_v21 }
  0x96   : > { %703 = vadd.xlane.f32.xlu0 %v702_v55 }
  0xc6   : > { %v733_v56 = vpop.permute.xlu2 %732 }
  0xc7   : > { %v735_v57 = vmul.f32 %v733_v56, %v729_v13 }
  0xc9   : > { %v751_v0 = vmul.f32 %v735_v57, %v735_v57 }
  0xcb   : > { %v753_v29 = vsel %vm752_vm15, %v751_v0, 0.0 }
  0xcc   : > { %754 = vadd.xlane.f32.xlu2 %v753_v29 }
  0xde   : > { %v737_v59 = vpop.permute.xlu0 %736 }
  0xdf   : > { %v740_v9 = vsel %vm739_vm0, %v737_v59, 0.0 }
  0xe0   : > { %741 = vadd.xlane.f32.xlu1 %v740_v9 }
  0xe4   : > { %v716_v60 = vpop.xlane.xlu1 %715 }
  0xe5   : > { %v717_v27 = vrot.slane %v716_v60, 4 }
  0xe7   : > { %v718_v61 = vadd.f32 %v717_v27, %v716_v60 }
  0xe9   : > { %v719_v62 = vrot.slane %v718_v61, 2 }
  0xeb   : > { %v720_v1 = vadd.f32 %v719_v62, %v718_v61 }
  0xed   : > { %v721_v4 = vrot.slane %v720_v1, 1 }
  0xef   : > { %v722_v11 = vadd.f32 %v721_v4, %v720_v1 }
 0x109   : > { %v704_v63 = vpop.xlane.xlu0 %703 }
 0x10a   : > { %v705_v10 = vrot.slane %v704_v63, 4 }
 0x10c   : > { %v706_v3 = vadd.f32 %v705_v10, %v704_v63 }
 0x10e   : > { %v707_v6 = vrot.slane %v706_v3, 2 }
 0x110   : > { %v708_v15 = vadd.f32 %v707_v6, %v706_v3 }
 0x112   : > { %v709_v7 = vrot.slane %v708_v15, 1 }
 0x114   : > { %v710_v12 = vadd.f32 %v709_v7, %v708_v15 }
 0x116   : > { %912 = vpush %v710_v12 }
 0x117   : > { %914 = vpush %v722_v11 }
 0x13f   : > { %v755_v47 = vpop.xlane.xlu2 %754 }
 0x140   : > { %v756_v22 = vrot.slane %v755_v47, 4 }
 0x142   : > { %v757_v14 = vadd.f32 %v756_v22, %v755_v47 }
 0x144   : > { %v758_v23 = vrot.slane %v757_v14, 2 }
 0x146   : > { %v759_v24 = vadd.f32 %v758_v23, %v757_v14 }
 0x147   : > { %s1278_s10 = spop %912 }
 0x148   : > { %v760_v25 = vrot.slane %v759_v24, 1  ;;  %s1280_s11 = spop %914  ;;  %v784_v28 = vstv %s1278_s10 }
 0x149   : > { %v787_v41 = vstv %s1280_s11  ;;  %v785_v43 = vsel %vm783_vm5, %v784_v28, 0.0 }
 0x14a   : > { %v761_v18 = vadd.f32 %v760_v25, %v759_v24  ;;  %v788_v58 = vsel %vm786_vm6, %v787_v41, 0.0 }
 0x14b   : > { %v789_v44 = vadd.f32 %v788_v58, %v785_v43 }
 0x153   : > { %v742_v36 = vpop.xlane.xlu1 %741 }
 0x154   : > { %v743_v42 = vrot.slane %v742_v36, 4 }
 0x156   : > { %v744_v16 = vadd.f32 %v743_v42, %v742_v36 }
 0x158   : > { %v745_v5 = vrot.slane %v744_v16, 2 }
 0x15a   : > { %v746_v30 = vadd.f32 %v745_v5, %v744_v16 }
 0x15c   : > { %v747_v17 = vrot.slane %v746_v30, 1 }
 0x15e   : > { %v748_v20 = vadd.f32 %v747_v17, %v746_v30 }
 0x160   : > { %916 = vpush %v748_v20 }
 0x161   : > { %918 = vpush %v761_v18 }
 0x191   : > { %s917_s12 = spop %916 }
 0x192   : > { %s750_s13 = smul.f32 3.0, %s917_s12  ;;  %s919_s16 = spop %918 }
 0x194   : > { %s764_s15 = smax.f32 %s1033_s14, %s750_s13  ;;  %p763_p8 = scmp.gt.f32.partialorder %s750_s13, 0.0 }
 0x195   : > { %v765_v52 = vstv %s764_s15 }
 0x196   : > { %1004 = vrcp.f32 %v765_v52  ;;  %v777_v19 = vand.u32 2147483648, %v765_v52  ;;  %v775_v48 = vand.u32 2147483647, %v765_v52  ;;  %vm771_vm2 = vweird.f32 %v765_v52 }
 0x198   : > { %v778_v31 = vor.u32 1.1754944e-38, %v777_v19  ;;  %vm776_vm4 = vcmp.eq.f32.partialorder %v775_v48, 8.507059e+37 }
 0x19c   : > { %v1005_v26 = vpop.eup %1004 }
 0x19d   : > { %v767_v32 = vmul.f32 %v1005_v26, %v765_v52  ;;  %vm772_vm1 = vweird.f32 %v1005_v26 }
 0x19e   : > { %vm773_vm3 = vmor %vm771_vm2, %vm772_vm1 }
 0x19f   : > { %v768_v33 = vsub.f32 1.0, %v767_v32 }
 0x1a1   : > { %v769_v35 = vmul.f32 %v1005_v26, %v768_v33 }
 0x1a3   : > { %v770_v37 = vadd.f32 %v1005_v26, %v769_v35 }
 0x1a5   : > { %v774_v38 = vsel %vm773_vm3, %v1005_v26, %v770_v37 }
 0x1a6   : > { %v779_v40 = vsel %vm776_vm4, %v778_v31, %v774_v38 }
 0x1a7   : > { %920 = vpush %v779_v40 }
 0x1d8   : > { %s921_s17 = spop %920 }
 0x1d9   : > { %s781_s18 = smul.f32 %s921_s17, %s919_s16 }
 0x1db   : > { %s1313_s18 = smov (!%p763_p8, %s781_s18), 0.0 }
 0x1dc   : > { %v791_v45 = vstv %s1313_s18 }
 0x1dd   : > { %v792_v46 = vsel %vm790_vm7, %v791_v45, 0.0 }
 0x1de   : > { %v793_v21 = vadd.f32 %v792_v46, %v789_v44 }
 0x1e0   : > { %794 = vst [vmem:[%s1101_s9] sm:$0xff] %v793_v21 }
 0x1e1 PF: > { %s16_s23 = sadd.s32 1, %s1028_s23   ;;  %s1304_s21 = smov %s1024_s22 }
 0x1e2   : > { %p13_p9 = scmp.ge.s32.totalorder %s16_s23, 4   ;;  %s1305_s22 = smov %s1307_s24 }
 0x1e4   :  { %15 = sbr.rel (!%p13_p9) target bundleno = 2 (0x2), region = 95 }

</bundles_post_ra>
